<compile_context>
chip_gen: v7x
topology: tpu7x:2x2x1
jax: 0.10.0
libtpu: 0.0.40
codegen_flags: <defaults>
</compile_context>

<pallas_src>
import jax
import jax.numpy as jnp
from jax.experimental import pallas as pl
from jax.experimental.pallas import tpu as pltpu


def _round_up(v, m):
    return (v + m - 1) // m * m


# ---------------------------------------------------------------------------
# Kernel 1: per-row-block projections y = x @ W (alpha already folded into W).
# ---------------------------------------------------------------------------
def _project_kernel(x_ref, wt_self_ref, wt_s2d_ref, wt_d2s_ref, b_ref,
                    y_self_ref, y_s2d_ref, y_d2s_ref):
    x = x_ref[...]
    y_self_ref[...] = (
        jnp.dot(x, wt_self_ref[...], preferred_element_type=jnp.float32)
        + b_ref[...])
    y_s2d_ref[...] = jnp.dot(
        x, wt_s2d_ref[...], preferred_element_type=jnp.float32
    ).astype(y_s2d_ref.dtype)
    y_d2s_ref[...] = jnp.dot(
        x, wt_d2s_ref[...], preferred_element_type=jnp.float32
    ).astype(y_d2s_ref.dtype)


# ---------------------------------------------------------------------------
# Kernel 2: out[i] = y_self[i] + sum_k A_fwd[i,k] @ y_s2d[k] + A_bwd[i,k] @ y_d2s[k]
# ---------------------------------------------------------------------------
def _aggregate_kernel(y_self_ref, a_fwd_ref, a_bwd_ref, y_s2d_ref, y_d2s_ref,
                      out_ref, acc_ref):
    k = pl.program_id(1)

    @pl.when(k == 0)
    def _():
        acc_ref[...] = y_self_ref[...]          # bias + self path, added once

    acc_ref[...] += (
        jnp.dot(a_fwd_ref[...], y_s2d_ref[...],
                preferred_element_type=jnp.float32)
        + jnp.dot(a_bwd_ref[...], y_d2s_ref[...],
                  preferred_element_type=jnp.float32))

    @pl.when(k == pl.num_programs(1) - 1)
    def _():
        out_ref[...] = acc_ref[...]


def dirsage_conv(x, edge_index, params, alpha, *, tm=128, tk=128):
    """x: [N, D_in] float32, edge_index: [2, E] int32."""
    n, d_in = x.shape
    d_out = params["w_self"].shape[0]
    alpha = float(alpha)

    tile = max(tm, tk)
    assert tile % min(tm, tk) == 0
    n_pad = _round_up(max(n, tile), tile)
    d_in_pad = _round_up(d_in, 128)
    d_out_pad = _round_up(d_out, 128)

    # --- glue: dense row-normalized adjacencies via O(E) scatter-add --------
    src = edge_index[0].astype(jnp.int32)
    dst = edge_index[1].astype(jnp.int32)
    counts_fwd = jnp.zeros((n_pad, n_pad), jnp.float32).at[dst, src].add(1.0)
    counts_bwd = counts_fwd.T            # row i aggregates its out-neighbors

    def row_norm(c):
        deg = jnp.sum(c, axis=1, keepdims=True)
        return jnp.where(deg > 0, c / jnp.maximum(deg, 1.0), 0.0)

    # bf16 adjacency stream: halves HBM traffic on the dominant O(N^2) term.
    a_fwd = row_norm(counts_fwd).astype(jnp.bfloat16)
    a_bwd = row_norm(counts_bwd).astype(jnp.bfloat16)

    # --- pad to lane-dense shapes; fold alpha and biases on the host --------
    x_pad = jnp.zeros((n_pad, d_in_pad), jnp.float32).at[:n, :d_in].set(
        x.astype(jnp.float32))

    def pad_wt(w, scale):
        wt = jnp.zeros((d_in_pad, d_out_pad), jnp.float32)
        return wt.at[:d_in, :d_out].set(scale * w.T.astype(jnp.float32))

    wt_self = pad_wt(params["w_self"], 1.0)
    wt_s2d = pad_wt(params["w_s2d"], 1.0 - alpha)
    wt_d2s = pad_wt(params["w_d2s"], alpha)

    b_total = (params["b_self"].astype(jnp.float32)
               + (1.0 - alpha) * params["b_s2d"].astype(jnp.float32)
               + alpha * params["b_d2s"].astype(jnp.float32))
    b_pad = jnp.zeros((1, d_out_pad), jnp.float32).at[0, :d_out].set(b_total)

    # --- kernel 1: projections, gridded over row tiles ----------------------
    proj_grid = pltpu.PrefetchScalarGridSpec(
        num_scalar_prefetch=0,
        grid=(n_pad // tm,),
        in_specs=[
            pl.BlockSpec((tm, d_in_pad), lambda i: (i, 0)),
            pl.BlockSpec((d_in_pad, d_out_pad), lambda i: (0, 0)),
            pl.BlockSpec((d_in_pad, d_out_pad), lambda i: (0, 0)),
            pl.BlockSpec((d_in_pad, d_out_pad), lambda i: (0, 0)),
            pl.BlockSpec((1, d_out_pad), lambda i: (0, 0)),
        ],
        out_specs=[
            pl.BlockSpec((tm, d_out_pad), lambda i: (i, 0)),
            pl.BlockSpec((tm, d_out_pad), lambda i: (i, 0)),
            pl.BlockSpec((tm, d_out_pad), lambda i: (i, 0)),
        ],
    )
    y_self, y_s2d, y_d2s = pl.pallas_call(
        _project_kernel,
        out_shape=(
            jax.ShapeDtypeStruct((n_pad, d_out_pad), jnp.float32),
            jax.ShapeDtypeStruct((n_pad, d_out_pad), jnp.bfloat16),
            jax.ShapeDtypeStruct((n_pad, d_out_pad), jnp.bfloat16),
        ),
        grid_spec=proj_grid,
        compiler_params=pltpu.CompilerParams(
            dimension_semantics=("parallel",)),
    )(x_pad, wt_self, wt_s2d, wt_d2s, b_pad)

    # --- kernel 2: stream adjacency tiles, accumulate into the output -------
    agg_grid = pltpu.PrefetchScalarGridSpec(
        num_scalar_prefetch=0,
        grid=(n_pad // tm, n_pad // tk),
        in_specs=[
            pl.BlockSpec((tm, d_out_pad), lambda i, k: (i, 0)),   # y_self
            pl.BlockSpec((tm, tk), lambda i, k: (i, k)),          # A_fwd tile
            pl.BlockSpec((tm, tk), lambda i, k: (i, k)),          # A_bwd tile
            pl.BlockSpec((tk, d_out_pad), lambda i, k: (k, 0)),   # y_s2d
            pl.BlockSpec((tk, d_out_pad), lambda i, k: (k, 0)),   # y_d2s
        ],
        out_specs=pl.BlockSpec((tm, d_out_pad), lambda i, k: (i, 0)),
        scratch_shapes=[pltpu.VMEM((tm, d_out_pad), jnp.float32)],
    )
    out_pad = pl.pallas_call(
        _aggregate_kernel,
        out_shape=jax.ShapeDtypeStruct((n_pad, d_out_pad), jnp.float32),
        grid_spec=agg_grid,
        compiler_params=pltpu.CompilerParams(
            dimension_semantics=("parallel", "arbitrary")),
    )(y_self, a_fwd, a_bwd, y_s2d, y_d2s)

    return out_pad[:n, :d_out]


def _reference(x, edge_index, params, alpha):
    """Pure-JAX f32 reference mirroring PyG SAGEConv(root_weight=False, aggr=mean)."""
    n = x.shape[0]
    src, dst = edge_index[0], edge_index[1]

    def mean_aggr(targets, sources):
        summed = jax.ops.segment_sum(x[sources], targets, num_segments=n)
        deg = jax.ops.segment_sum(jnp.ones_like(targets, jnp.float32),
                                  targets, num_segments=n)
        return jnp.where(deg[:, None] > 0,
                         summed / jnp.maximum(deg, 1.0)[:, None], 0.0)

    agg_fwd = mean_aggr(dst, src)   # source_to_target
    agg_bwd = mean_aggr(src, dst)   # target_to_source

    lin_self = x @ params["w_self"].T + params["b_self"]
    s2d = agg_fwd @ params["w_s2d"].T + params["b_s2d"]
    d2s = agg_bwd @ params["w_d2s"].T + params["b_d2s"]
    return lin_self + (1.0 - alpha) * s2d + alpha * d2s


if __name__ == "__main__":
    # Small demo sizes; padded internally to 128-lane tiles, N padded to 256
    # so the aggregation grid is (2, 2) and actually exercises accumulation.
    N, D_IN, D_OUT, E = 200, 8, 4, 600
    ALPHA = 0.3

    key = jax.random.PRNGKey(0)
    kx, ks, kd, k1, k2, k3, k4, k5, k6 = jax.random.split(key, 9)

    x = jax.random.normal(kx, (N, D_IN), dtype=jnp.float32)
    edge_index = jnp.stack([
        jax.random.randint(ks, (E,), 0, N, dtype=jnp.int32),
        jax.random.randint(kd, (E,), 0, N, dtype=jnp.int32),
    ])

    def lin_init(kw, kb, fan_in, shape):
        bound = 1.0 / jnp.sqrt(fan_in)
        w = jax.random.uniform(kw, shape, jnp.float32, -bound, bound)
        b = jax.random.uniform(kb, (shape[0],), jnp.float32, -bound, bound)
        return w, b

    w_self, b_self = lin_init(k1, k2, D_IN, (D_OUT, D_IN))
    w_s2d, b_s2d = lin_init(k3, k4, D_IN, (D_OUT, D_IN))
    w_d2s, b_d2s = lin_init(k5, k6, D_IN, (D_OUT, D_IN))

    params = dict(w_self=w_self, b_self=b_self,
                  w_s2d=w_s2d, b_s2d=b_s2d,
                  w_d2s=w_d2s, b_d2s=b_d2s)

    out = dirsage_conv(x, edge_index, params, ALPHA)
    out = jax.block_until_ready(out)

    ref = _reference(x, edge_index, params, ALPHA)
    assert out.shape == (N, D_OUT)
    # Loose tolerance: adjacency stream + projected features are bf16 on the MXU.
    max_err = float(jnp.max(jnp.abs(out - ref)))
    assert max_err < 5e-2, f"max abs err {max_err}"
    print("KERNEL_OK")
</pallas_src>

<mosaic_0001>
module attributes {stable_mosaic.version = 11 : i64} {
  func.func @_project_kernel(%arg0: i32, %arg1: memref<128x128xf32, #tpu.memory_space<vmem>>, %arg2: memref<128x128xf32, #tpu.memory_space<vmem>>, %arg3: memref<128x128xf32, #tpu.memory_space<vmem>>, %arg4: memref<128x128xf32, #tpu.memory_space<vmem>>, %arg5: memref<1x128xf32, #tpu.memory_space<vmem>>, %arg6: memref<128x128xf32, #tpu.memory_space<vmem>>, %arg7: memref<128x128xbf16, #tpu.memory_space<vmem>>, %arg8: memref<128x128xbf16, #tpu.memory_space<vmem>>) attributes {dimension_semantics = [#tpu.dimension_semantics<parallel>], iteration_bounds = array<i64: 2>, scalar_prefetch = 0 : i64, scratch_operands = 0 : i64, tpu.core_type = #tpu.core_type<tc>, window_params = [{transform_indices = @transform_0, window_bounds = array<i64: 128, 128>}, {pipeline_mode = #tpu.pipeline_mode<synchronous>, transform_indices = @transform_1, window_bounds = array<i64: 128, 128>}, {pipeline_mode = #tpu.pipeline_mode<synchronous>, transform_indices = @transform_2, window_bounds = array<i64: 128, 128>}, {pipeline_mode = #tpu.pipeline_mode<synchronous>, transform_indices = @transform_3, window_bounds = array<i64: 128, 128>}, {pipeline_mode = #tpu.pipeline_mode<synchronous>, transform_indices = @transform_4, window_bounds = array<i64: 1, 128>}, {transform_indices = @transform_5, window_bounds = array<i64: 128, 128>}, {transform_indices = @transform_6, window_bounds = array<i64: 128, 128>}, {transform_indices = @transform_7, window_bounds = array<i64: 128, 128>}]} {
    %c0 = arith.constant 0 : index
    %c0_0 = arith.constant 0 : index
    %0 = vector.load %arg1[%c0, %c0_0] : memref<128x128xf32, #tpu.memory_space<vmem>>, vector<128x128xf32>
    %c0_1 = arith.constant 0 : index
    %c0_2 = arith.constant 0 : index
    %1 = vector.load %arg2[%c0_1, %c0_2] : memref<128x128xf32, #tpu.memory_space<vmem>>, vector<128x128xf32>
    %cst = arith.constant dense<0.000000e+00> : vector<128x128xf32>
    %2 = tpu.matmul %0, %1, %cst {dimension_numbers = #tpu.dot_dimension_numbers<[1], [0], [0], [1], [0, 0, 1, 1], [], []>} : vector<128x128xf32>, vector<128x128xf32>, vector<128x128xf32> -> vector<128x128xf32>
    %c0_3 = arith.constant 0 : index
    %c0_4 = arith.constant 0 : index
    %3 = vector.load %arg5[%c0_3, %c0_4] : memref<1x128xf32, #tpu.memory_space<vmem>>, vector<1x128xf32>
    %4 = vector.broadcast %3 : vector<1x128xf32> to vector<128x128xf32>
    %5 = arith.addf %2, %4 : vector<128x128xf32>
    %c0_5 = arith.constant 0 : index
    %c0_6 = arith.constant 0 : index
    %6 = vector.load %arg6[%c0_5, %c0_6] : memref<128x128xf32, #tpu.memory_space<vmem>>, vector<128x128xf32>
    tpu.vector_store %arg6[%c0_5, %c0_6], %5 {strides = array<i32>} : memref<128x128xf32, #tpu.memory_space<vmem>>, vector<128x128xf32>,
    %c0_7 = arith.constant 0 : index
    %c0_8 = arith.constant 0 : index
    %7 = vector.load %arg3[%c0_7, %c0_8] : memref<128x128xf32, #tpu.memory_space<vmem>>, vector<128x128xf32>
    %cst_9 = arith.constant dense<0.000000e+00> : vector<128x128xf32>
    %8 = tpu.matmul %0, %7, %cst_9 {dimension_numbers = #tpu.dot_dimension_numbers<[1], [0], [0], [1], [0, 0, 1, 1], [], []>} : vector<128x128xf32>, vector<128x128xf32>, vector<128x128xf32> -> vector<128x128xf32>
    %9 = arith.truncf %8 : vector<128x128xf32> to vector<128x128xbf16>
    %c0_10 = arith.constant 0 : index
    %c0_11 = arith.constant 0 : index
    %10 = vector.load %arg7[%c0_10, %c0_11] : memref<128x128xbf16, #tpu.memory_space<vmem>>, vector<128x128xbf16>
    tpu.vector_store %arg7[%c0_10, %c0_11], %9 {strides = array<i32>} : memref<128x128xbf16, #tpu.memory_space<vmem>>, vector<128x128xbf16>,
    %c0_12 = arith.constant 0 : index
    %c0_13 = arith.constant 0 : index
    %11 = vector.load %arg4[%c0_12, %c0_13] : memref<128x128xf32, #tpu.memory_space<vmem>>, vector<128x128xf32>
    %cst_14 = arith.constant dense<0.000000e+00> : vector<128x128xf32>
    %12 = tpu.matmul %0, %11, %cst_14 {dimension_numbers = #tpu.dot_dimension_numbers<[1], [0], [0], [1], [0, 0, 1, 1], [], []>} : vector<128x128xf32>, vector<128x128xf32>, vector<128x128xf32> -> vector<128x128xf32>
    %13 = arith.truncf %12 : vector<128x128xf32> to vector<128x128xbf16>
    %c0_15 = arith.constant 0 : index
    %c0_16 = arith.constant 0 : index
    %14 = vector.load %arg8[%c0_15, %c0_16] : memref<128x128xbf16, #tpu.memory_space<vmem>>, vector<128x128xbf16>
    tpu.vector_store %arg8[%c0_15, %c0_16], %13 {strides = array<i32>} : memref<128x128xbf16, #tpu.memory_space<vmem>>, vector<128x128xbf16>,
    return
  }
  func.func @transform_0(%arg0: i32) -> (i32, i32) {
    %c0_i32 = arith.constant 0 : i32
    %c0_i32_0 = arith.constant 0 : i32
    return %arg0, %c0_i32 : i32, i32
  }
  func.func @transform_1(%arg0: i32) -> (i32, i32) {
    %c0_i32 = arith.constant 0 : i32
    %c0_i32_0 = arith.constant 0 : i32
    %c0_i32_1 = arith.constant 0 : i32
    return %c0_i32, %c0_i32_0 : i32, i32
  }
  func.func @transform_2(%arg0: i32) -> (i32, i32) {
    %c0_i32 = arith.constant 0 : i32
    %c0_i32_0 = arith.constant 0 : i32
    %c0_i32_1 = arith.constant 0 : i32
    return %c0_i32, %c0_i32_0 : i32, i32
  }
  func.func @transform_3(%arg0: i32) -> (i32, i32) {
    %c0_i32 = arith.constant 0 : i32
    %c0_i32_0 = arith.constant 0 : i32
    %c0_i32_1 = arith.constant 0 : i32
    return %c0_i32, %c0_i32_0 : i32, i32
  }
  func.func @transform_4(%arg0: i32) -> (i32, i32) {
    %c0_i32 = arith.constant 0 : i32
    %c0_i32_0 = arith.constant 0 : i32
    %c0_i32_1 = arith.constant 0 : i32
    return %c0_i32, %c0_i32_0 : i32, i32
  }
  func.func @transform_5(%arg0: i32) -> (i32, i32) {
    %c0_i32 = arith.constant 0 : i32
    %c0_i32_0 = arith.constant 0 : i32
    return %arg0, %c0_i32 : i32, i32
  }
  func.func @transform_6(%arg0: i32) -> (i32, i32) {
    %c0_i32 = arith.constant 0 : i32
    %c0_i32_0 = arith.constant 0 : i32
    return %arg0, %c0_i32 : i32, i32
  }
  func.func @transform_7(%arg0: i32) -> (i32, i32) {
    %c0_i32 = arith.constant 0 : i32
    %c0_i32_0 = arith.constant 0 : i32
    return %arg0, %c0_i32 : i32, i32
  }
}

</mosaic_0001>

<bundles_post_ra>
// kernel: tpu_custom_call.1
= control target key start
LH: loop header
LB: loop body
LE: loop exit
PB: predicated region body
PF: predicated region fallthrough
CT: control target
= control target key end

     0   :  { %13 = vsyncpa [#allocation3], 0  ;;  %s2703_s0 = inlined_call_operand.hbm [shape: f32[256,128], index: 0, kind: input, shape index: {}]   ;;  %s2704_s1 = inlined_call_operand.hbm [shape: f32[128,128], index: 1, kind: input, shape index: {}]   ;;  %s2705_s2 = inlined_call_operand.hbm [shape: f32[128,128], index: 2, kind: input, shape index: {}]   ;;  %s2706_s3 = inlined_call_operand.hbm [shape: f32[128,128], index: 3, kind: input, shape index: {}]   ;;  %s2707_s4 = inlined_call_operand.vmem [shape: f32[1,128], index: 4, kind: input, shape index: {}]   ;;  %s2708_s5 = inlined_call_operand.hbm [shape: f32[256,128], index: 5, kind: output, shape index: {0}]   ;;  %s2709_s6 = inlined_call_operand.hbm [shape: bf16[256,128], index: 6, kind: output, shape index: {1}]   ;;  %s2710_s7 = inlined_call_operand.hbm [shape: bf16[256,128], index: 7, kind: output, shape index: {2}]  }
   0x1   :  { %15 = vsyncpa [#allocation3 + $0x1], 0 }
   0x2   :  { %16 = vsyncpa [#allocation6], 0 }
   0x3   :  { %17 = vsyncpa [#allocation9], 0 }
   0x4   :  { %18 = vsyncpa [#allocation4], 0 }
   0x5   :  { %20 = vsyncpa [#allocation4 + $0x1], 0 }
   0x6   :  { %21 = vsyncpa [#allocation12], 0 }
   0x7   :  { %23 = vsyncpa [#allocation12 + $0x1], 0  ;;  %s2227_s24 = smov 0   ;;  %s2229_s25 = smov 0  }
   0x8   :  { %s2231_s26 = smov 0   ;;  %s2233_s27 = smov 0  }
   0x9 LB: > { %s2248_s28 = sadd.s32 4294967295, %s2172_s27   ;;  %s2712_s29 = sadd.s32 4294967294, %s2172_s27   ;;  %s2172_s27 = sphi %s2233_s27, %s2742_s27   ;;  %s2168_s26 = sphi %s2231_s26, %s2741_s26   ;;  %s2164_s25 = sphi %s2229_s25, %s2740_s25   ;;  %s2160_s24 = sphi %s2227_s24, %s2739_s24  }
   0xa   : > { %p49_p0 = scmp.ne.s32.totalorder %s2164_s25, %s2160_s24  ;;  %p2711_p1 = scmp.eq.s32.totalorder %s2248_s28, 0 }
   0xb   : > { %p163_p3 = scmp.eq.s32.totalorder %s2712_s29, 1  ;;  %p1265_p5 = scmp.ge.s32.totalorder %s2172_s27, 1 }
   0xc   : > { %p2259_p4 = por %p2711_p1, %p49_p0  ;;  %p222_p7 = scmp.lt.s32.totalorder %s2172_s27, 3 }
   0xd   : > { %p2264_p6 = por %p163_p3, %p49_p0  ;;  %s2174_s10 = smov [#allocation5]  }
   0xe   : > { %s2718_s30 = scalar_select %p2259_p4, 1, 0 }
   0xf   : > { %s2719_s8 = scalar_select %p2264_p6, 1, 0 }
  0x10   : > { %p2269_p8 = pnand %p1265_p5, %p222_p7  ;;  %s234_s11 = sshll.u32 %s2174_s10, 4  ;;  %s2273_s11 = int_to_ptr.vmem [resolvable:$true] %s234_s11 }
  0x11   : > { %2720 = sst [smem:[#allocation19_spill]] %s2719_s8  ;;  %s2175_s13 = smov [#allocation7]  }
  0x12   : > { %s2721_s9 = scalar_select %p2269_p8, 1, 0 }
  0x13   : > { %p1851_p9 = pneg %p2269_p8  ;;  %s247_s14 = sshll.u32 %s2175_s13, 4  ;;  %s2284_s14 = int_to_ptr.vmem [resolvable:$true] %s247_s14 }
  0x14   : > { %s2176_s15 = smov [#allocation8]   ;;  %s1924_s19 = scalar_lea.hbm %s2704_s1, 2048 }
  0x15   : > { %p2280_p11 = pnand %p1851_p9, %p2711_p1  ;;  %s2286_s16 = sshll.u32 %s2176_s15, 4  ;;  %s261_s16 = int_to_ptr.vmem [resolvable:$true] %s2286_s16 }
  0x16   : > { %p1925_p12 = scmp.ne.s32.totalorder %s2704_s1, %s1924_s19  ;;  %p1931_p5 = scmp.lt.u32.totalorder %s1924_s19, %s2704_s1 }
  0x17   : > { %p2296_p13 = pneg %p2280_p11 }
  0x19   : > { %p1927_p0 = pnand %p2296_p13, %p1925_p12 }
  0x1b   : > { %p1928_p3 = pneg %p1927_p0 }
  0x1d   : > { %p1933_p7 = pnand %p1931_p5, %p1928_p3 }
  0x1f   : > { %1936 = shalt.err (!%p1933_p7)
}
  0x20   : > { %s1937_s13 = scalar_lea.vmem %s2273_s11, 2048  ;;  %p1945_p2 = scmp.lt.s32.totalorder %s2273_s11, %s2273_s11 }
  0x21   : > { %p1938_p9 = scmp.ne.s32.totalorder %s2273_s11, %s1937_s13  ;;  %p1946_p6 = scmp.lt.s32.totalorder %s1937_s13, %s1937_s13 }
  0x23   : > { %p1940_p10 = pnand %p1938_p9, %p2296_p13  ;;  %p1947_p12 = por %p1946_p6, %p1945_p2 }
  0x25   : > { %p1941_p1 = pneg %p1940_p10 }
  0x27   : > { %p1948_p0 = pnand %p1947_p12, %p1941_p1 }
  0x29   : > { %1951 = shalt.err (!%p1948_p0)
}
  0x2a   : > { %s2177_s15 = smov 128   ;;  %s2178_s17 = smov 8  }
  0x2b   : > { %1854 = dma.hbm_to_vmem [thread:$0]  (!%p2280_p11), %s2704_s1, 2048, %s2273_s11, [#allocation6], %s2177_s15, %s2177_s15, %s2178_s17  }
  0x2c   : > { %s1952_s23 = scalar_lea.hbm %s2705_s2, 2048 }
  0x2d   : > { %p1953_p1 = scmp.ne.s32.totalorder %s2705_s2, %s1952_s23  ;;  %p1959_p10 = scmp.lt.u32.totalorder %s1952_s23, %s2705_s2 }
  0x2f   : > { %p1955_p2 = pnand %p1953_p1, %p2296_p13 }
  0x31   : > { %p1956_p6 = pneg %p1955_p2 }
  0x33   : > { %p1961_p3 = pnand %p1959_p10, %p1956_p6 }
  0x35   : > { %1964 = shalt.err (!%p1961_p3)
}
  0x36   : > { %s1965_s11 = scalar_lea.vmem %s2284_s14, 2048  ;;  %p1973_p12 = scmp.lt.s32.totalorder %s2284_s14, %s2284_s14 }
  0x37   : > { %p1966_p5 = scmp.ne.s32.totalorder %s2284_s14, %s1965_s11  ;;  %p1974_p0 = scmp.lt.s32.totalorder %s1965_s11, %s1965_s11 }
  0x39   : > { %p1968_p7 = pnand %p1966_p5, %p2296_p13  ;;  %p1975_p1 = por %p1974_p0, %p1973_p12 }
  0x3b   : > { %p1969_p9 = pneg %p1968_p7 }
  0x3d   : > { %p1976_p2 = pnand %p1975_p1, %p1969_p9 }
  0x3f   : > { %1979 = shalt.err (!%p1976_p2)
}
  0x40   : > { %1857 = dma.hbm_to_vmem [thread:$0]  (!%p2280_p11), %s2705_s2, 2048, %s2284_s14, [#allocation6], %s2177_s15, %s2177_s15, %s2178_s17  }
  0x41   : > { %s1980_s20 = scalar_lea.hbm %s2706_s3, 2048 }
  0x42   : > { %p1981_p6 = scmp.ne.s32.totalorder %s2706_s3, %s1980_s20  ;;  %p1987_p5 = scmp.lt.u32.totalorder %s1980_s20, %s2706_s3 }
  0x44   : > { %p1983_p10 = pnand %p1981_p6, %p2296_p13 }
  0x46   : > { %p1984_p3 = pneg %p1983_p10 }
  0x48   : > { %p1989_p7 = pnand %p1987_p5, %p1984_p3 }
  0x4a   : > { %1992 = shalt.err (!%p1989_p7)
}
  0x4b   : > { %s1993_s11 = scalar_lea.vmem %s261_s16, 2048  ;;  %p2001_p1 = scmp.lt.s32.totalorder %s261_s16, %s261_s16 }
  0x4c   : > { %p1994_p9 = scmp.ne.s32.totalorder %s261_s16, %s1993_s11  ;;  %p2002_p2 = scmp.lt.s32.totalorder %s1993_s11, %s1993_s11 }
  0x4e   : > { %p1996_p12 = pnand %p1994_p9, %p2296_p13  ;;  %p2003_p4 = por %p2002_p2, %p2001_p1 }
  0x50   : > { %p1997_p0 = pneg %p1996_p12 }
  0x52   : > { %p2004_p8 = pnand %p2003_p4, %p1997_p0 }
  0x54   : > { %2007 = shalt.err (!%p2004_p8)
}
  0x55   : > { %1860 = dma.hbm_to_vmem [thread:$0]  (!%p2280_p11), %s2706_s3, 2048, %s261_s16, [#allocation9], %s2177_s15, %s2177_s15, %s2178_s17  }
  0x56   : > { %s2369_s22 = sadd.s32 1, %s2172_s27   ;;  %s36_s8 = sadd.s32 1, %s2168_s26 }
  0x57   : > { %s33_s12 = ssub.s32 %s2172_s27, %s2369_s22  ;;  %p43_p8 = scmp.ne.s32.totalorder %s2168_s26, %s2164_s25 }
  0x58   : > { %p34_p4 = scmp.eq.s32.totalorder %s33_s12, 0  ;;  %p44_p13 = scmp.eq.s32.totalorder %s2172_s27, 0 }
  0x59   : > { %p1878_p6 = scmp.lt.s32.totalorder %s2172_s27, 2  ;;  %p2724_p3 = scmp.eq.s32.totalorder %s2248_s28, 1 }
  0x5a   : > { %s2379_s18 = scalar_select %p34_p4, %s2168_s26, %s36_s8  }
  0x5b   : > { %p45_p10 = por %p44_p13, %p43_p8  ;;  %p2383_p5 = por %p2724_p3, %p43_p8 }
  0x5c   : > { %s277_s20 = sand.u32 1, %s2168_s26   ;;  %s1325_s21 = sshll.u32 %s2172_s27, 11 }
  0x5d   : > { %s1270_s16 = sshll.u32 %s277_s20, 7  ;;  %s2392_s13 = scalar_lea.hbm %s2703_s0, %s1325_s21 }
  0x5e   : > { %s281_s11 = scalar_lea.vmem [#allocation2], %s1270_s16  ;;  %p2394_p11 = pnand %p1878_p6, %p45_p10 }
  0x5f   : > { %s288_s14 = sshll.u32 %s281_s11, 4  ;;  %s2400_s12 = scalar_lea.sflag [#allocation3], %s277_s20  ;;  %s2398_s14 = int_to_ptr.vmem [resolvable:$true] %s288_s14 }
  0x60   : > { %s2008_s8 = scalar_lea.hbm %s2392_s13, 2048  ;;  %p2010_p9 = pneg %p2394_p11 }
  0x61   : > { %p2009_p7 = scmp.ne.s32.totalorder %s2392_s13, %s2008_s8  ;;  %s2013_s23 = scalar_lea.hbm %s2703_s0, 4096 }
  0x62   : > { %p2014_p1 = scmp.lt.u32.totalorder %s2392_s13, %s2703_s0  ;;  %p2015_p2 = scmp.lt.u32.totalorder %s2013_s23, %s2008_s8 }
  0x63   : > { %p2011_p12 = pnand %p2010_p9, %p2009_p7  ;;  %p2017_p8 = scmp.lt.u32.totalorder %s2008_s8, %s2392_s13 }
  0x64   : > { %p2016_p4 = por %p2015_p2, %p2014_p1 }
  0x65   : > { %p2012_p0 = pneg %p2011_p12 }
  0x66   : > { %p2018_p13 = por %p2017_p8, %p2016_p4 }
  0x68   : > { %p2019_p6 = pnand %p2018_p13, %p2012_p0 }
  0x6a   : > { %2022 = shalt.err (!%p2019_p6)
}
  0x6b   : > { %s2023_s20 = scalar_lea.vmem %s2398_s14, 2048  ;;  %s2179_s21 = smov [#allocation2]  }
  0x6c   : > { %p2024_p10 = scmp.ne.s32.totalorder %s2398_s14, %s2023_s20  ;;  %s2028_s16 = sshll.u32 %s2179_s21, 4  ;;  %s2029_s16 = int_to_ptr.vmem [resolvable:$false] %s2028_s16 }
  0x6d   : > { %s2030_s10 = scalar_lea.vmem %s2029_s16, 4096  ;;  %p2031_p12 = scmp.lt.s32.totalorder %s2398_s14, %s2029_s16 }
  0x6e   : > { %p2026_p3 = pnand %p2024_p10, %p2010_p9  ;;  %p2032_p1 = scmp.lt.s32.totalorder %s2030_s10, %s2023_s20 }
  0x70   : > { %p2027_p7 = pneg %p2026_p3  ;;  %p2033_p2 = por %p2032_p1, %p2031_p12 }
  0x72   : > { %p2034_p4 = pnand %p2033_p2, %p2027_p7 }
  0x74   : > { %2037 = shalt.err (!%p2034_p4)
}
  0x75   : > { %1864 = dma.hbm_to_vmem [thread:$0]  (!%p2394_p11), %s2392_s13, 2048, %s2398_s14, %s2400_s12, %s2177_s15, %s2177_s15, %s2178_s17  }
  0x76   : > { %p2727_p9 = scmp.ne.s32.totalorder %s2721_s9, 0 }
  0x77   : > { %s2434_s8 = sand.u32 (!%p2727_p9), 1, %s2164_s25   ;;  %p2728_p0 = scmp.ne.s32.totalorder (!%p2727_p9), %s2718_s30, 0 }
  0x78   : > { %300 = sbr.rel (%p2727_p9) target bundleno = 478 (0x1de), region = 40  ;;  %s1274_s23 = sshll.u32 (!%p2727_p9), %s2434_s8, 7 }
  0x79   : > { %s303_s11 = scalar_lea.sflag (!%p2727_p9), [#allocation3], %s2434_s8  ;;  %s2440_s29 = scalar_lea.vmem (!%p2727_p9), [#allocation2], %s1274_s23 }
  0x7f   : > { %2139 = dma.done.wait (%p2728_p0), %s303_s11, 2048  }
  0x80   : > { %2141 = vsyncadd (%p2728_p0), %s303_s11, 4294965248  ;;  %p2729_p11 = scmp.eq.s32.totalorder %s2248_s28, 0 }
  0x82   : > { %2143 = dma.done.wait (%p2729_p11), [#allocation6], 4096   ;;  %p2730_p8 = pmov %p2729_p11 }
  0x84   : > { %2145 = vsyncadd (%p2730_p8), [#allocation6], 4294963200  ;;  %p2731_p13 = pmov %p2730_p8 }
  0x85   : > { %p2732_p6 = pmov %p2730_p8 }
  0x86   : > { %2147 = dma.done.wait (%p2731_p13), [#allocation9], 2048  }
  0x87   : > { %2149 = vsyncadd (%p2732_p6), [#allocation9], 4294965248  ;;  %v379_v0 = vld [vmem:[#allocation5] sm:$0xff]  ;;  %v380_v1 = vld [vmem:[#allocation5 + $0x8] sm:$0xff]  ;;  %s2717_s15 = sshll.u32 %s2434_s8, 6  ;;  %s2520_s17 = scalar_lea.vmem [#allocation10], %s1274_s23 }
  0x88   : > { %v563_v2 = vld [vmem:[#allocation7] sm:$0xff]  ;;  %v1719_v3 = vpack.c.bf16 %v380_v1, %v379_v0  ;;  %v564_v4 = vld [vmem:[#allocation7 + $0x8] sm:$0xff]  ;;  %v381_v5 = vld [vmem:[#allocation5 + $0x10] sm:$0xff]  ;;  %s2526_s13 = scalar_lea.vmem [#allocation11], %s2717_s15  ;;  %s1050_s12 = sand.u32 1, %s2248_s28  }
  0x89   : > { %v382_v6 = vld [vmem:[#allocation5 + $0x18] sm:$0xff]  ;;  %v1751_v7 = vpack.c.bf16 %v564_v4, %v563_v2  ;;  %v565_v9 = vld [vmem:[#allocation7 + $0x10] sm:$0xff]  ;;  %v383_v11 = vld [vmem:[#allocation5 + $0x20] sm:$0xff]  ;;  %s1085_s14 = sshll.u32 %s2526_s13, 4  ;;  %s2716_s20 = sshll.u32 %s2248_s28, 10  ;;  %s2561_s14 = int_to_ptr.vmem [resolvable:$true] %s1085_s14 }
  0x8a   : > { %v1723_v8 = vpack.c.bf16 %v382_v6, %v381_v5  ;;  %v566_v10 = vld [vmem:[#allocation7 + $0x18] sm:$0xff]  ;;  %1720 = vmatprep.subr.bf16.mxu0 %v1719_v3  ;;  %v384_v13 = vld [vmem:[#allocation5 + $0x28] sm:$0xff]  ;;  %v567_v14 = vld [vmem:[#allocation7 + $0x20] sm:$0xff]  ;;  %s1358_s21 = sshll.u32 %s2248_s28, 11  ;;  %s1069_s16 = sshll.u32 %s2520_s17, 4  ;;  %s2579_s16 = int_to_ptr.vmem [resolvable:$true] %s1069_s16 }
  0x8b   : > { %v1755_v12 = vpack.c.bf16 %v566_v10, %v565_v9  ;;  %v568_v15 = vld [vmem:[#allocation7 + $0x28] sm:$0xff]  ;;  %1752 = vmatprep.subr.bf16.mxu1 %v1751_v7  ;;  %1722 = vmatpush3.bf16.msra.mxu0 %v1719_v3  ;;  %v1727_v16 = vpack.c.bf16 %v384_v13, %v383_v11  ;;  %v385_v18 = vld [vmem:[#allocation5 + $0x30] sm:$0xff]  ;;  %v386_v19 = vld [vmem:[#allocation5 + $0x38] sm:$0xff]  ;;  %s2570_s11 = scalar_lea.hbm %s2709_s6, %s2716_s20  ;;  %s2577_s9 = scalar_lea.hbm %s2708_s5, %s1358_s21 }
  0x8c   : > { %1754 = vmatpush3.bf16.msra.mxu1 %v1751_v7  ;;  %1724 = vmatprep.subr.bf16.mxu0 %v1723_v8  ;;  %v1759_v17 = vpack.c.bf16 %v568_v15, %v567_v14  ;;  %v569_v20 = vld [vmem:[#allocation7 + $0x30] sm:$0xff]  ;;  %v570_v21 = vld [vmem:[#allocation7 + $0x38] sm:$0xff]  ;;  %v1731_v22 = vpack.c.bf16 %v386_v19, %v385_v18  ;;  %v387_v24 = vld [vmem:[#allocation5 + $0x40] sm:$0xff]  ;;  %s1046_s21 = scalar_lea.sflag [#allocation4], %s2434_s8  ;;  %s2038_s10 = scalar_lea.vmem %s2579_s16, 2048 }
  0x8d   : > { %1756 = vmatprep.subr.bf16.mxu1 %v1755_v12  ;;  %v1763_v23 = vpack.c.bf16 %v570_v21, %v569_v20  ;;  %v388_v25 = vld [vmem:[#allocation5 + $0x48] sm:$0xff]  ;;  %v2455_v26 = vld [vmem:[%s2440_s29] sm:$0xff]  ;;  %v389_v31 = vld [vmem:[#allocation5 + $0x50] sm:$0xff]  ;;  %p2039_p10 = scmp.ne.s32.totalorder %s2579_s16, %s2038_s10  ;;  %s2180_s23 = smov [#allocation10]  }
  0x8e   : > { %v571_v27 = vld [vmem:[#allocation7 + $0x40] sm:$0xff]  ;;  %v572_v28 = vld [vmem:[#allocation7 + $0x48] sm:$0xff]  ;;  %1583 = vmatprep.mubr.f32.mxu0 %v2455_v26  ;;  %1639 = vmatprep.mubr.f32.mxu1 %v2455_v26  ;;  %v1735_v29 = vpack.c.bf16 %v388_v25, %v387_v24  ;;  %v390_v32 = vld [vmem:[#allocation5 + $0x58] sm:$0xff] }
  0x8f   : > { %1726 = vmatpush3.bf16.msra.mxu0 %v1723_v8  ;;  %v1767_v30 = vpack.c.bf16 %v572_v28, %v571_v27  ;;  %v573_v33 = vld [vmem:[#allocation7 + $0x50] sm:$0xff]  ;;  %v574_v34 = vld [vmem:[#allocation7 + $0x58] sm:$0xff]  ;;  %v1739_v35 = vpack.c.bf16 %v390_v32, %v389_v31  ;;  %v391_v37 = vld [vmem:[#allocation5 + $0x60] sm:$0xff]  ;;  %p2040_p3 = pnand %p2039_p10, %p2383_p5 }
  0x90   : > { %1758 = vmatpush3.bf16.msra.mxu1 %v1755_v12  ;;  %1728 = vmatprep.subr.bf16.mxu0 %v1727_v16  ;;  %v1771_v36 = vpack.c.bf16 %v574_v34, %v573_v33  ;;  %v392_v38 = vld [vmem:[#allocation5 + $0x68] sm:$0xff]  ;;  %v575_v39 = vld [vmem:[#allocation7 + $0x60] sm:$0xff]  ;;  %v393_v43 = vld [vmem:[#allocation5 + $0x70] sm:$0xff] }
  0x91   : > { %1760 = vmatprep.subr.bf16.mxu1 %v1759_v17  ;;  %v576_v40 = vld [vmem:[#allocation7 + $0x68] sm:$0xff]  ;;  %v1743_v41 = vpack.c.bf16 %v392_v38, %v391_v37  ;;  %v394_v44 = vld [vmem:[#allocation5 + $0x78] sm:$0xff]  ;;  %v577_v45 = vld [vmem:[#allocation7 + $0x70] sm:$0xff]  ;;  %p2041_p7 = pneg %p2040_p3 }
  0x92   : > { %v1775_v42 = vpack.c.bf16 %v576_v40, %v575_v39  ;;  %v578_v46 = vld [vmem:[#allocation7 + $0x78] sm:$0xff]  ;;  %v1747_v47 = vpack.c.bf16 %v394_v44, %v393_v43  ;;  %v804_v49 = vld [vmem:[#allocation8] sm:$0xff]  ;;  %v805_v50 = vld [vmem:[#allocation8 + $0x8] sm:$0xff] }
  0x93   : > { %1730 = vmatpush3.bf16.msra.mxu0 %v1727_v16  ;;  %v1779_v48 = vpack.c.bf16 %v578_v46, %v577_v45  ;;  %v1783_v51 = vpack.c.bf16 %v805_v50, %v804_v49  ;;  %v806_v52 = vld [vmem:[#allocation8 + $0x10] sm:$0xff]  ;;  %v807_v53 = vld [vmem:[#allocation8 + $0x18] sm:$0xff]  ;;  %v2460_v54 = vld [vmem:[%s2440_s29 + $0x8] sm:$0xff] }
  0x94   : > { %1762 = vmatpush3.bf16.msra.mxu1 %v1759_v17  ;;  %1732 = vmatprep.subr.bf16.mxu0 %v1731_v22  ;;  %v2463_v55 = vld [vmem:[%s2440_s29 + $0x10] sm:$0xff]  ;;  %v1787_v56 = vpack.c.bf16 %v807_v53, %v806_v52  ;;  %v808_v57 = vld [vmem:[#allocation8 + $0x20] sm:$0xff]  ;;  %v809_v58 = vld [vmem:[#allocation8 + $0x28] sm:$0xff] }
  0x95   : > { %1764 = vmatprep.subr.bf16.mxu1 %v1763_v23  ;;  %v2468_v59 = vld [vmem:[%s2440_s29 + $0x18] sm:$0xff]  ;;  %v2473_v60 = vld [vmem:[%s2440_s29 + $0x20] sm:$0xff]  ;;  %v1791_v61 = vpack.c.bf16 %v809_v58, %v808_v57  ;;  %v810_v62 = vld [vmem:[#allocation8 + $0x30] sm:$0xff] }
  0x96   : > { %v811_v63 = vld [vmem:[#allocation8 + $0x38] sm:$0xff]  ;;  %v2478_v0 = vld [vmem:[%s2440_s29 + $0x28] sm:$0xff]  ;;  %v2483_v1 = vld [vmem:[%s2440_s29 + $0x30] sm:$0xff] }
  0x97   : > { %1734 = vmatpush3.bf16.msra.mxu0 %v1731_v22  ;;  %v1795_v2 = vpack.c.bf16 %v811_v63, %v810_v62  ;;  %v812_v3 = vld [vmem:[#allocation8 + $0x40] sm:$0xff]  ;;  %v813_v4 = vld [vmem:[#allocation8 + $0x48] sm:$0xff]  ;;  %v2488_v5 = vld [vmem:[%s2440_s29 + $0x38] sm:$0xff] }
  0x98   : > { %1766 = vmatpush3.bf16.msra.mxu1 %v1763_v23  ;;  %1736 = vmatprep.subr.bf16.mxu0 %v1735_v29  ;;  %v371_v6 = vld [vmem:[%s2440_s29 + $0x40] sm:$0xff]  ;;  %v1799_v7 = vpack.c.bf16 %v813_v4, %v812_v3  ;;  %v814_v8 = vld [vmem:[#allocation8 + $0x50] sm:$0xff]  ;;  %v815_v9 = vld [vmem:[#allocation8 + $0x58] sm:$0xff] }
  0x99   : > { %1768 = vmatprep.subr.bf16.mxu1 %v1767_v30  ;;  %v372_v10 = vld [vmem:[%s2440_s29 + $0x48] sm:$0xff]  ;;  %v373_v11 = vld [vmem:[%s2440_s29 + $0x50] sm:$0xff]  ;;  %v1803_v12 = vpack.c.bf16 %v815_v9, %v814_v8  ;;  %v816_v13 = vld [vmem:[#allocation8 + $0x60] sm:$0xff] }
  0x9a   : > { %v817_v14 = vld [vmem:[#allocation8 + $0x68] sm:$0xff]  ;;  %v374_v15 = vld [vmem:[%s2440_s29 + $0x58] sm:$0xff]  ;;  %v375_v16 = vld [vmem:[%s2440_s29 + $0x60] sm:$0xff] }
  0x9b   : > { %1738 = vmatpush3.bf16.msra.mxu0 %v1735_v29  ;;  %v1807_v17 = vpack.c.bf16 %v817_v14, %v816_v13  ;;  %v818_v18 = vld [vmem:[#allocation8 + $0x70] sm:$0xff]  ;;  %v819_v19 = vld [vmem:[#allocation8 + $0x78] sm:$0xff]  ;;  %v376_v20 = vld [vmem:[%s2440_s29 + $0x68] sm:$0xff] }
  0x9c   : > { %1770 = vmatpush3.bf16.msra.mxu1 %v1767_v30  ;;  %1740 = vmatprep.subr.bf16.mxu0 %v1739_v35  ;;  %v377_v21 = vld [vmem:[%s2440_s29 + $0x70] sm:$0xff]  ;;  %v1811_v22 = vpack.c.bf16 %v819_v19, %v818_v18  ;;  %v378_v23 = vld [vmem:[%s2440_s29 + $0x78] sm:$0xff]  ;;  %v2513_v24 = vld [vmem:[%s2707_s4] ss:$0 sm:$0xff]  ;;  %s2042_s29 = sshll.u32 %s2180_s23, 4  ;;  %s2043_s29 = int_to_ptr.vmem [resolvable:$false] %s2042_s29 }
  0x9d   : > { %1772 = vmatprep.subr.bf16.mxu1 %v1771_v36  ;;  %s2044_s30 = scalar_lea.vmem %s2043_s29, 4096  ;;  %p2045_p12 = scmp.lt.s32.totalorder %s2579_s16, %s2043_s29 }
  0x9e   : > { %p2046_p1 = scmp.lt.s32.totalorder %s2044_s30, %s2038_s10 }
  0x9f   : > { %1742 = vmatpush3.bf16.msra.mxu0 %v1739_v35 }
  0xa0   : > { %1774 = vmatpush3.bf16.msra.mxu1 %v1771_v36  ;;  %1744 = vmatprep.subr.bf16.mxu0 %v1743_v41  ;;  %p2047_p2 = por %p2046_p1, %p2045_p12 }
  0xa1   : > { %1776 = vmatprep.subr.bf16.mxu1 %v1775_v42 }
  0xa2   : > { %p2048_p4 = pnand %p2047_p2, %p2041_p7 }
  0xa3   : > { %1746 = vmatpush3.bf16.msra.mxu0 %v1743_v41 }
  0xa4   : > { %1778 = vmatpush3.bf16.msra.mxu1 %v1775_v42  ;;  %1748 = vmatprep.subr.bf16.mxu0 %v1747_v47 }
  0xa5   : > { %1780 = vmatprep.subr.bf16.mxu1 %v1779_v48 }
  0xa7   : > { %1750 = vmatpush3.bf16.msra.mxu0 %v1747_v47 }
  0xa8   : > { %1782 = vmatpush3.bf16.msra.mxu1 %v1779_v48  ;;  %1784 = vmatprep.subr.bf16.mxu0 %v1783_v51 }
  0xa9   : > { %1815 = vmatprep.subr.bf16.mxu1 %v1783_v51 }
  0xaa   : > { %1584 = vmatmul.mubr.f32.vlgmr.msra.gmra.mrb[0].mxu0 %v2460_v54 }
  0xab   : > { %1640 = vmatmul.mubr.f32.vlgmr.msra.gmra.mrb[0].mxu1 %v2460_v54  ;;  %1786 = vmatpush3.bf16.msra.mxu0 %v1783_v51 }
  0xac   : > { %1823 = vmatpush3.bf16.msra.mxu1 %v1783_v51  ;;  %1586 = vmatprep.mubr.f32.mxu0 %v2463_v55 }
  0xad   : > { %1642 = vmatprep.mubr.f32.mxu1 %v2463_v55  ;;  %1788 = vmatprep.subr.bf16.mxu0 %v1787_v56 }
  0xae   : > { %1587 = vmatmul.mubr.f32.gmra.mrb[2].mxu0 %v2468_v59  ;;  %1816 = vmatprep.subr.bf16.mxu1 %v1787_v56 }
  0xaf   : > { %1643 = vmatmul.mubr.f32.gmra.mrb[2].mxu1 %v2468_v59  ;;  %1790 = vmatpush3.bf16.msra.mxu0 %v1787_v56 }
  0xb0   : > { %1824 = vmatpush3.bf16.msra.mxu1 %v1787_v56  ;;  %1589 = vmatprep.mubr.f32.mxu0 %v2473_v60 }
  0xb1   : > { %1645 = vmatprep.mubr.f32.mxu1 %v2473_v60  ;;  %1792 = vmatprep.subr.bf16.mxu0 %v1791_v61 }
  0xb2   : > { %1590 = vmatmul.mubr.f32.gmra.mrb[4].mxu0 %v2478_v0  ;;  %1817 = vmatprep.subr.bf16.mxu1 %v1791_v61 }
  0xb3   : > { %1646 = vmatmul.mubr.f32.gmra.mrb[4].mxu1 %v2478_v0  ;;  %1794 = vmatpush3.bf16.msra.mxu0 %v1791_v61 }
  0xb4   : > { %1825 = vmatpush3.bf16.msra.mxu1 %v1791_v61  ;;  %1592 = vmatprep.mubr.f32.mxu0 %v2483_v1 }
  0xb5   : > { %1648 = vmatprep.mubr.f32.mxu1 %v2483_v1  ;;  %1796 = vmatprep.subr.bf16.mxu0 %v1795_v2 }
  0xb6   : > { %1593 = vmatmul.mubr.f32.gmra.mrb[6].mxu0 %v2488_v5  ;;  %1818 = vmatprep.subr.bf16.mxu1 %v1795_v2 }
  0xb7   : > { %1649 = vmatmul.mubr.f32.gmra.mrb[6].mxu1 %v2488_v5  ;;  %1798 = vmatpush3.bf16.msra.mxu0 %v1795_v2 }
  0xb8   : > { %1826 = vmatpush3.bf16.msra.mxu1 %v1795_v2  ;;  %1595 = vmatprep.mubr.f32.mxu0 %v371_v6 }
  0xb9   : > { %1651 = vmatprep.mubr.f32.mxu1 %v371_v6  ;;  %1800 = vmatprep.subr.bf16.mxu0 %v1799_v7 }
  0xba   : > { %1596 = vmatmul.mubr.f32.gmra.mrb[8].mxu0 %v372_v10  ;;  %1819 = vmatprep.subr.bf16.mxu1 %v1799_v7 }
  0xbb   : > { %1652 = vmatmul.mubr.f32.gmra.mrb[8].mxu1 %v372_v10  ;;  %1802 = vmatpush3.bf16.msra.mxu0 %v1799_v7 }
  0xbc   : > { %1827 = vmatpush3.bf16.msra.mxu1 %v1799_v7  ;;  %1598 = vmatprep.mubr.f32.mxu0 %v373_v11 }
  0xbd   : > { %1654 = vmatprep.mubr.f32.mxu1 %v373_v11  ;;  %1804 = vmatprep.subr.bf16.mxu0 %v1803_v12 }
  0xbe   : > { %1599 = vmatmul.mubr.f32.gmra.mrb[10].mxu0 %v374_v15  ;;  %1820 = vmatprep.subr.bf16.mxu1 %v1803_v12 }
  0xbf   : > { %1655 = vmatmul.mubr.f32.gmra.mrb[10].mxu1 %v374_v15  ;;  %1806 = vmatpush3.bf16.msra.mxu0 %v1803_v12 }
  0xc0   : > { %1828 = vmatpush3.bf16.msra.mxu1 %v1803_v12  ;;  %1601 = vmatprep.mubr.f32.mxu0 %v375_v16 }
  0xc1   : > { %1657 = vmatprep.mubr.f32.mxu1 %v375_v16  ;;  %1808 = vmatprep.subr.bf16.mxu0 %v1807_v17 }
  0xc2   : > { %1602 = vmatmul.mubr.f32.gmra.mrb[12].mxu0 %v376_v20  ;;  %1821 = vmatprep.subr.bf16.mxu1 %v1807_v17 }
  0xc3   : > { %1658 = vmatmul.mubr.f32.gmra.mrb[12].mxu1 %v376_v20  ;;  %1810 = vmatpush3.bf16.msra.mxu0 %v1807_v17 }
  0xc4   : > { %1829 = vmatpush3.bf16.msra.mxu1 %v1807_v17  ;;  %1604 = vmatprep.mubr.f32.mxu0 %v377_v21 }
  0xc5   : > { %1660 = vmatprep.mubr.f32.mxu1 %v377_v21  ;;  %1812 = vmatprep.subr.bf16.mxu0 %v1811_v22 }
  0xc6   : > { %1605 = vmatmul.mubr.f32.gmra.mrb[14].mxu0 %v378_v23  ;;  %1822 = vmatprep.subr.bf16.mxu1 %v1811_v22 }
  0xc7   : > { %1661 = vmatmul.mubr.f32.gmra.mrb[14].mxu1 %v378_v23  ;;  %1814 = vmatpush3.bf16.msra.mxu0 %v1811_v22 }
  0xc8   : > { %1830 = vmatpush3.bf16.msra.mxu1 %v1811_v22  ;;  %1695 = vmatprep.mubr.f32.mxu0 %v2455_v26 }
  0xc9   : > { %1707 = vmatprep.mubr.f32.mxu1 %v371_v6 }
  0xca   : > { %1696 = vmatmul.mubr.f32.vlgmr.msra.gmra.mrb[16].mxu0 %v2460_v54 }
  0xcb   : > { %1708 = vmatmul.mubr.f32.vlgmr.msra.gmra.mrb[16].mxu1 %v372_v10  ;;  %1698 = vmatprep.mubr.f32.mxu0 %v2463_v55 }
  0xcc   : > { %1710 = vmatprep.mubr.f32.mxu1 %v373_v11 }
  0xce   : > { %1699 = vmatmul.mubr.f32.gmra.mrb[18].mxu0 %v2468_v59 }
  0xcf   : > { %1711 = vmatmul.mubr.f32.gmra.mrb[18].mxu1 %v374_v15  ;;  %1701 = vmatprep.mubr.f32.mxu0 %v2473_v60 }
  0xd0   : > { %1713 = vmatprep.mubr.f32.mxu1 %v375_v16 }
  0xd2   : > { %1702 = vmatmul.mubr.f32.gmra.mrb[20].mxu0 %v2478_v0 }
  0xd3   : > { %1714 = vmatmul.mubr.f32.gmra.mrb[20].mxu1 %v376_v20  ;;  %1704 = vmatprep.mubr.f32.mxu0 %v2483_v1 }
  0xd4   : > { %1716 = vmatprep.mubr.f32.mxu1 %v377_v21 }
  0xd6   : > { %1705 = vmatmul.mubr.f32.gmra.mrb[22].mxu0 %v2488_v5 }
  0xd7   : > { %1717 = vmatmul.mubr.f32.gmra.mrb[22].mxu1 %v378_v23 }
 0x17d   : > { %v1585_v25 = vpop.f32.mrb[0].mxu0 }
 0x17e   : > { %v474_v26 = vadd.f32 %v1585_v25, %v2513_v24  ;;  %v1641_v27 = vpop.f32.mrb[0].mxu1  ;;  %v468_v28 = vpop.f32.mrb[1].mxu0 }
 0x17f   : > { %v469_v29 = vadd.f32 %v2513_v24, %v468_v28  ;;  %v645_v30 = vpop.f32.mrb[1].mxu1 }
 0x180   : > { %548 = vst [vmem:[%s2520_s17 + $0x8] sm:$0xff] %v474_v26  ;;  %v1364_v31 = vpack.c.bf16 %v1641_v27, %v645_v30 }
 0x181   : > { %547 = vst [vmem:[%s2520_s17] sm:$0xff] %v469_v29  ;;  %v1588_v32 = vpop.f32.mrb[2].mxu0 }
 0x182   : > { %1365 = vst [vmem:[%s2526_s13] sm:$0xff] %v1364_v31   ;;  %v484_v33 = vadd.f32 %v1588_v32, %v2513_v24  ;;  %v1644_v34 = vpop.f32.mrb[2].mxu1  ;;  %v478_v35 = vpop.f32.mrb[3].mxu0 }
 0x183   : > { %v479_v36 = vadd.f32 %v2513_v24, %v478_v35  ;;  %v655_v37 = vpop.f32.mrb[3].mxu1 }
 0x184   : > { %550 = vst [vmem:[%s2520_s17 + $0x18] sm:$0xff] %v484_v33  ;;  %v1369_v38 = vpack.c.bf16 %v1644_v34, %v655_v37 }
 0x185   : > { %549 = vst [vmem:[%s2520_s17 + $0x10] sm:$0xff] %v479_v36  ;;  %v1591_v39 = vpop.f32.mrb[4].mxu0 }
 0x186   : > { %1441 = vst [vmem:[%s2526_s13 + $0x8] sm:$0xff] %v1369_v38   ;;  %v494_v40 = vadd.f32 %v1591_v39, %v2513_v24  ;;  %v1647_v41 = vpop.f32.mrb[4].mxu1  ;;  %v488_v42 = vpop.f32.mrb[5].mxu0 }
 0x187   : > { %v489_v43 = vadd.f32 %v2513_v24, %v488_v42  ;;  %v665_v44 = vpop.f32.mrb[5].mxu1 }
 0x188   : > { %552 = vst [vmem:[%s2520_s17 + $0x28] sm:$0xff] %v494_v40  ;;  %v1374_v45 = vpack.c.bf16 %v1647_v41, %v665_v44 }
 0x189   : > { %551 = vst [vmem:[%s2520_s17 + $0x20] sm:$0xff] %v489_v43  ;;  %v1594_v46 = vpop.f32.mrb[6].mxu0 }
 0x18a   : > { %1442 = vst [vmem:[%s2526_s13 + $0x10] sm:$0xff] %v1374_v45   ;;  %v504_v47 = vadd.f32 %v1594_v46, %v2513_v24  ;;  %v1650_v48 = vpop.f32.mrb[6].mxu1  ;;  %v498_v49 = vpop.f32.mrb[7].mxu0 }
 0x18b   : > { %v499_v50 = vadd.f32 %v2513_v24, %v498_v49  ;;  %v675_v51 = vpop.f32.mrb[7].mxu1 }
 0x18c   : > { %554 = vst [vmem:[%s2520_s17 + $0x38] sm:$0xff] %v504_v47  ;;  %v1379_v52 = vpack.c.bf16 %v1650_v48, %v675_v51 }
 0x18d   : > { %553 = vst [vmem:[%s2520_s17 + $0x30] sm:$0xff] %v499_v50  ;;  %v1597_v53 = vpop.f32.mrb[8].mxu0 }
 0x18e   : > { %1443 = vst [vmem:[%s2526_s13 + $0x18] sm:$0xff] %v1379_v52   ;;  %v514_v54 = vadd.f32 %v1597_v53, %v2513_v24  ;;  %v1653_v55 = vpop.f32.mrb[8].mxu1  ;;  %v508_v56 = vpop.f32.mrb[9].mxu0 }
 0x18f   : > { %v509_v57 = vadd.f32 %v2513_v24, %v508_v56  ;;  %v685_v58 = vpop.f32.mrb[9].mxu1 }
 0x190   : > { %556 = vst [vmem:[%s2520_s17 + $0x48] sm:$0xff] %v514_v54  ;;  %v1384_v59 = vpack.c.bf16 %v1653_v55, %v685_v58 }
 0x191   : > { %555 = vst [vmem:[%s2520_s17 + $0x40] sm:$0xff] %v509_v57  ;;  %v1600_v60 = vpop.f32.mrb[10].mxu0 }
 0x192   : > { %1444 = vst [vmem:[%s2526_s13 + $0x20] sm:$0xff] %v1384_v59   ;;  %v524_v61 = vadd.f32 %v1600_v60, %v2513_v24  ;;  %v1656_v62 = vpop.f32.mrb[10].mxu1  ;;  %v518_v63 = vpop.f32.mrb[11].mxu0 }
 0x193   : > { %v519_v0 = vadd.f32 %v2513_v24, %v518_v63  ;;  %v695_v1 = vpop.f32.mrb[11].mxu1 }
 0x194   : > { %558 = vst [vmem:[%s2520_s17 + $0x58] sm:$0xff] %v524_v61  ;;  %v1389_v2 = vpack.c.bf16 %v1656_v62, %v695_v1 }
 0x195   : > { %557 = vst [vmem:[%s2520_s17 + $0x50] sm:$0xff] %v519_v0  ;;  %v1603_v3 = vpop.f32.mrb[12].mxu0 }
 0x196   : > { %1445 = vst [vmem:[%s2526_s13 + $0x28] sm:$0xff] %v1389_v2   ;;  %v534_v4 = vadd.f32 %v1603_v3, %v2513_v24  ;;  %v1659_v5 = vpop.f32.mrb[12].mxu1  ;;  %v528_v6 = vpop.f32.mrb[13].mxu0 }
 0x197   : > { %v529_v7 = vadd.f32 %v2513_v24, %v528_v6  ;;  %v705_v8 = vpop.f32.mrb[13].mxu1 }
 0x198   : > { %560 = vst [vmem:[%s2520_s17 + $0x68] sm:$0xff] %v534_v4  ;;  %v1394_v9 = vpack.c.bf16 %v1659_v5, %v705_v8 }
 0x199   : > { %559 = vst [vmem:[%s2520_s17 + $0x60] sm:$0xff] %v529_v7  ;;  %v1606_v10 = vpop.f32.mrb[14].mxu0 }
 0x19a   : > { %1446 = vst [vmem:[%s2526_s13 + $0x30] sm:$0xff] %v1394_v9   ;;  %v544_v11 = vadd.f32 %v1606_v10, %v2513_v24  ;;  %v1662_v12 = vpop.f32.mrb[14].mxu1  ;;  %v538_v13 = vpop.f32.mrb[15].mxu0 }
 0x19b   : > { %v539_v14 = vadd.f32 %v2513_v24, %v538_v13  ;;  %v715_v15 = vpop.f32.mrb[15].mxu1 }
 0x19c   : > { %562 = vst [vmem:[%s2520_s17 + $0x78] sm:$0xff] %v544_v11  ;;  %v1399_v16 = vpack.c.bf16 %v1662_v12, %v715_v15 }
 0x19d   : > { %561 = vst [vmem:[%s2520_s17 + $0x70] sm:$0xff] %v539_v14  ;;  %v2584_v17 = vpop.f32.mrb[16].mxu0 }
 0x19e   : > { %1447 = vst [vmem:[%s2526_s13 + $0x38] sm:$0xff] %v1399_v16   ;;  %v2587_v18 = vpop.f32.mrb[16].mxu1  ;;  %v2589_v19 = vpop.f32.mrb[17].mxu0 }
 0x19f   : > { %2051 = shalt.err (!%p2048_p4)
}
 0x1a0   : > { %s2052_s17 = scalar_lea.hbm %s2577_s9, 2048  ;;  %s2056_s23 = scalar_lea.hbm %s2708_s5, 4096 }
 0x1a1   : > { %p2053_p9 = scmp.ne.s32.totalorder %s2577_s9, %s2052_s17  ;;  %p2057_p8 = scmp.lt.u32.totalorder %s2577_s9, %s2708_s5 }
 0x1a2   : > { %p2058_p13 = scmp.lt.u32.totalorder %s2056_s23, %s2052_s17  ;;  %p2060_p10 = scmp.lt.u32.totalorder %s2052_s17, %s2577_s9 }
 0x1a3   : > { %p2054_p0 = pnand %p2053_p9, %p2383_p5 }
 0x1a4   : > { %p2059_p6 = por %p2058_p13, %p2057_p8 }
 0x1a5   : > { %p2055_p11 = pneg %p2054_p0 }
 0x1a6   : > { %p2061_p3 = por %p2060_p10, %p2059_p6 }
 0x1a8   : > { %p2062_p7 = pnand %p2061_p3, %p2055_p11 }
 0x1aa   : > { %2065 = shalt.err (!%p2062_p7)
}
 0x1ab   : > { %s2181_s10 = smov 128   ;;  %s2182_s20 = smov 8   ;;  %v1404_v20 = vpack.c.bf16 %v2584_v17, %v2589_v19  ;;  %v926_v21 = vpop.f32.mrb[17].mxu1 }
 0x1ac   : > { %1845 = dma.vmem_to_hbm [thread:$0]  (%p2383_p5), %s2579_s16, 2048, %s2577_s9, %s1046_s21, %s2181_s10, %s2181_s10, %s2182_s20  }
 0x1ad   : > { %s2619_s15 = scalar_lea.sflag [#allocation12], %s1050_s12  ;;  %s2066_s30 = scalar_lea.vmem %s2561_s14, 1024 }
 0x1ae   : > { %p2067_p12 = scmp.ne.s32.totalorder %s2561_s14, %s2066_s30  ;;  %s2183_s17 = smov [#allocation11]  }
 0x1af   : > { %s2070_s13 = sshll.u32 %s2183_s17, 4  ;;  %s2071_s13 = int_to_ptr.vmem [resolvable:$false] %s2070_s13 }
 0x1b0   : > { %p2068_p1 = pnand %p2067_p12, %p2383_p5  ;;  %s2072_s23 = scalar_lea.vmem %s2071_s13, 2048 }
 0x1b1   : > { %p2073_p4 = scmp.lt.s32.totalorder %s2561_s14, %s2071_s13  ;;  %p2074_p9 = scmp.lt.s32.totalorder %s2072_s23, %s2066_s30 }
 0x1b2   : > { %p2069_p2 = pneg %p2068_p1 }
 0x1b3   : > { %p2075_p0 = por %p2074_p9, %p2073_p4 }
 0x1b5   : > { %p2076_p11 = pnand %p2075_p0, %p2069_p2 }
 0x1b7   : > { %2079 = shalt.err (!%p2076_p11)
}
 0x1b8   : > { %s2080_s12 = scalar_lea.hbm %s2570_s11, 1024  ;;  %s2084_s21 = scalar_lea.hbm %s2709_s6, 2048 }
 0x1b9   : > { %p2081_p8 = scmp.ne.s32.totalorder %s2570_s11, %s2080_s12  ;;  %p2085_p10 = scmp.lt.u32.totalorder %s2570_s11, %s2709_s6 }
 0x1ba   : > { %p2086_p3 = scmp.lt.u32.totalorder %s2084_s21, %s2080_s12  ;;  %p2088_p12 = scmp.lt.u32.totalorder %s2080_s12, %s2570_s11 }
 0x1bb   : > { %p2082_p13 = pnand %p2081_p8, %p2383_p5 }
 0x1bc   : > { %p2087_p7 = por %p2086_p3, %p2085_p10 }
 0x1bd   : > { %p2083_p6 = pneg %p2082_p13 }
 0x1be   : > { %p2089_p1 = por %p2088_p12, %p2087_p7 }
 0x1c0   : > { %p2090_p2 = pnand %p2089_p1, %p2083_p6 }
 0x1c2   : > { %2093 = shalt.err (!%p2090_p2)
}
 0x1c3   : > { %s2184_s20 = smov 64   ;;  %s2185_s30 = smov 4   ;;  %v1424_v22 = vpack.c.bf16 %v2587_v18, %v926_v21  ;;  %v1700_v23 = vpop.f32.mrb[18].mxu0  ;;  %v1712_v24 = vpop.f32.mrb[18].mxu1 }
 0x1c4   : > { %1846 = dma.vmem_to_hbm [thread:$0]  (%p2383_p5), %s2561_s14, 1024, %s2570_s11, %s2619_s15, %s2184_s20, %s2184_s20, %s2185_s30   ;;  %v896_v25 = vpop.f32.mrb[19].mxu0  ;;  %v936_v27 = vpop.f32.mrb[19].mxu1 }
 0x1c5   : > { %s2733_s17 = sshll.u32 %s2434_s8, 6  ;;  %v1409_v26 = vpack.c.bf16 %v1700_v23, %v896_v25  ;;  %v1429_v28 = vpack.c.bf16 %v1712_v24, %v936_v27  ;;  %v1703_v29 = vpop.f32.mrb[20].mxu0  ;;  %v1715_v30 = vpop.f32.mrb[20].mxu1  ;;  %s2734_s14 = sshll.u32 %s2248_s28, 10 }
 0x1c6   : > { %s358_s13 = scalar_lea.vmem [#allocation13], %s2733_s17  ;;  %v906_v31 = vpop.f32.mrb[21].mxu0  ;;  %v946_v33 = vpop.f32.mrb[21].mxu1  ;;  %s2656_s12 = scalar_lea.hbm %s2710_s7, %s2734_s14 }
 0x1c7   : > { %1405 = vst [vmem:[%s358_s13] sm:$0xff] %v1404_v20   ;;  %1451 = vst [vmem:[%s358_s13 + $0x20] sm:$0xff] %v1424_v22   ;;  %v1414_v32 = vpack.c.bf16 %v1703_v29, %v906_v31  ;;  %v1434_v34 = vpack.c.bf16 %v1715_v30, %v946_v33  ;;  %s1101_s8 = sshll.u32 %s358_s13, 4  ;;  %v1706_v35 = vpop.f32.mrb[22].mxu0  ;;  %v1718_v36 = vpop.f32.mrb[22].mxu1  ;;  %s2186_s9 = smov [#allocation13]   ;;  %s2649_s8 = int_to_ptr.vmem [resolvable:$true] %s1101_s8 }
 0x1c8   : > { %1448 = vst [vmem:[%s358_s13 + $0x8] sm:$0xff] %v1409_v26   ;;  %1452 = vst [vmem:[%s358_s13 + $0x28] sm:$0xff] %v1429_v28   ;;  %v916_v37 = vpop.f32.mrb[23].mxu0  ;;  %v956_v39 = vpop.f32.mrb[23].mxu1  ;;  %s2094_s16 = scalar_lea.vmem %s2649_s8, 1024  ;;  %s2098_s21 = sshll.u32 %s2186_s9, 4  ;;  %s2099_s21 = int_to_ptr.vmem [resolvable:$false] %s2098_s21 }
 0x1c9   : > { %1449 = vst [vmem:[%s358_s13 + $0x10] sm:$0xff] %v1414_v32   ;;  %1453 = vst [vmem:[%s358_s13 + $0x30] sm:$0xff] %v1434_v34   ;;  %v1419_v38 = vpack.c.bf16 %v1706_v35, %v916_v37  ;;  %v1439_v40 = vpack.c.bf16 %v1718_v36, %v956_v39  ;;  %p2095_p4 = scmp.ne.s32.totalorder %s2649_s8, %s2094_s16  ;;  %s2100_s29 = scalar_lea.vmem %s2099_s21, 2048 }
 0x1ca   : > { %p2101_p11 = scmp.lt.s32.totalorder %s2649_s8, %s2099_s21  ;;  %p2102_p8 = scmp.lt.s32.totalorder %s2100_s29, %s2094_s16 }
 0x1cb   : > { %1450 = vst [vmem:[%s358_s13 + $0x18] sm:$0xff] %v1419_v38   ;;  %1454 = vst [vmem:[%s358_s13 + $0x38] sm:$0xff] %v1439_v40   ;;  %p2096_p9 = pnand %p2095_p4, %p2383_p5 }
 0x1cc   : > { %p2103_p13 = por %p2102_p8, %p2101_p11 }
 0x1cd   : > { %p2097_p0 = pneg %p2096_p9 }
 0x1cf   : > { %p2104_p6 = pnand %p2103_p13, %p2097_p0 }
 0x1d1   : > { %2107 = shalt.err (!%p2104_p6)
}
 0x1d2   : > { %s2108_s28 = scalar_lea.hbm %s2656_s12, 1024  ;;  %s2112_s13 = scalar_lea.hbm %s2710_s7, 2048 }
 0x1d3   : > { %p2109_p10 = scmp.ne.s32.totalorder %s2656_s12, %s2108_s28  ;;  %p2113_p12 = scmp.lt.u32.totalorder %s2656_s12, %s2710_s7 }
 0x1d4   : > { %p2114_p1 = scmp.lt.u32.totalorder %s2112_s13, %s2108_s28  ;;  %p2116_p4 = scmp.lt.u32.totalorder %s2108_s28, %s2656_s12 }
 0x1d5   : > { %p2110_p3 = pnand %p2109_p10, %p2383_p5 }
 0x1d6   : > { %p2115_p2 = por %p2114_p1, %p2113_p12 }
 0x1d7   : > { %p2111_p7 = pneg %p2110_p3 }
 0x1d8   : > { %p2117_p9 = por %p2116_p4, %p2115_p2 }
 0x1da   : > { %p2118_p0 = pnand %p2117_p9, %p2111_p7 }
 0x1dc   : > { %2121 = shalt.err (!%p2118_p0)
}
 0x1dd   : > { %1847 = dma.vmem_to_hbm [thread:$0]  (%p2383_p5), %s2649_s8, 1024, %s2656_s12, %s2619_s15, %s2184_s20, %s2184_s20, %s2185_s30  }
 0x1de PF: > { %s2735_s23 = sld [smem:[#allocation19_spill]]  ;;  %s1116_s16 = sand.u32 1, %s2160_s24  }
 0x1df   : > { %p2737_p8 = scmp.ge.s32.totalorder %s2172_s27, 2  ;;  %s1117_s9 = scalar_lea.sflag [#allocation4], %s1116_s16 }
 0x1e4   : > { %p2736_p11 = scmp.ne.s32.totalorder %s2735_s23, 0 }
 0x1e6   : > { %p1866_p13 = pnand %p2737_p8, %p2736_p11 }
 0x1e8   : > { %2151 = dma.done.wait (!%p1866_p13), %s1117_s9, 2048  }
 0x1e9   : > { %2153 = vsyncadd (!%p1866_p13), %s1117_s9, 4294965248  ;;  %s2738_s19 = sadd.s32 4294967294, %s2172_s27  }
 0x1ea   : > { %s1125_s21 = sand.u32 1, %s2738_s19  }
 0x1eb   : > { %s1126_s29 = scalar_lea.sflag [#allocation12], %s1125_s21 }
 0x1ec   : > { %2155 = dma.done.wait (!%p1866_p13), %s1126_s29, 2048  }
 0x1ed   : > { %2157 = vsyncadd (!%p1866_p13), %s1126_s29, 4294965248  ;;  %p26_p5 = scmp.ge.s32.totalorder %s2369_s22, 4   ;;  %s2739_s24 = smov %s2164_s25 }
 0x1ee   : > { %s2740_s25 = smov %s2168_s26  ;;  %s2741_s26 = smov %s2379_s18 }
 0x1ef   : > { %s2742_s27 = smov %s2369_s22  ;;  %28 = sbr.rel (!%p26_p5) target bundleno = 9 (0x9), region = 129 }
 0x1f6   :  { %1140 = vsyncpa [#allocation3], 1 }
 0x1f7   :  { %1142 = vsyncpa [#allocation3 + $0x1], 1 }
 0x1f8   :  { %1143 = vsyncpa [#allocation6], 1 }
 0x1f9   :  { %1144 = vsyncpa [#allocation9], 1 }
 0x1fa   :  { %1145 = vsyncpa [#allocation4], 1 }
 0x1fb   :  { %1147 = vsyncpa [#allocation4 + $0x1], 1 }
 0x1fc   :  { %1148 = vsyncpa [#allocation12], 1 }
 0x1fd   :  { %1150 = vsyncpa [#allocation12 + $0x1], 1 }

</bundles_post_ra>
